<compile_context>
chip_gen: v7x
topology: tpu7x:2x2x1
jax: 0.10.0
libtpu: 0.0.40
codegen_flags: <defaults>
</compile_context>

<pallas_src>
from functools import partial

import jax
import jax.numpy as jnp
from jax.experimental import pallas as pl
from jax.experimental.pallas import tpu as pltpu


# --------------------------------------------------------------------------
# Fused Block kernel: conv3x3+ReLU -> conv3x3+ReLU.
# Layout: activations are (C, L) with L = Nb*H*W in lanes (flattened NCHW).
# --------------------------------------------------------------------------
def _block_kernel(x_ref, w1_ref, b1_ref, w2_ref, b2_ref, feat_ref, *, H, W, L):
    # x_ref:    (1, Cin, L)       lane-dense flattened NCHW input slab
    # w1_ref:   (Cmid, 9*Cin)     pre-flattened HWIO weights (tap-major, ci minor)
    # b1_ref:   (Cmid, 1)
    # w2_ref:   (Cmid, 9*Cmid)
    # b2_ref:   (Cmid, 1)
    # feat_ref: (1, Cmid, L)      lane-dense flattened NCHW output slab
    w_shift = (W - 1).bit_length()          # log2(W); W is a power of two

    def conv3x3_relu(x_cl, w_flat, b):
        C = x_cl.shape[0]
        # Per-lane (within-image) row / col indices via shifts (no int div).
        pos = jax.lax.broadcasted_iota(jnp.int32, (C, L), 1)
        ww = jnp.bitwise_and(pos, W - 1)
        hh = jnp.bitwise_and(jnp.right_shift(pos, w_shift), H - 1)

        # im2col: 9 lane-rolled copies of the slab, boundary-masked, stacked
        # along K.  Rolls are XLU work (free slot); masks are cheap VPU selects.
        pieces = []
        for kh in range(3):
            for kw in range(3):
                dh, dw = kh - 1, kw - 1
                off = dh * W + dw           # shift in flattened (h*W + w) index
                if off == 0:
                    shifted = x_cl
                else:
                    shifted = pltpu.roll(x_cl, shift=(-off) % L, axis=1)
                conds = []
                if dh == -1:
                    conds.append(hh >= 1)
                if dh == 1:
                    conds.append(hh < H - 1)
                if dw == -1:
                    conds.append(ww >= 1)
                if dw == 1:
                    conds.append(ww < W - 1)
                if conds:
                    m = conds[0]
                    for c in conds[1:]:
                        m = jnp.logical_and(m, c)
                    shifted = jnp.where(m, shifted, 0.0)
                pieces.append(shifted)
        slab = jnp.concatenate(pieces, axis=0)            # (9*C, L)

        # Single MXU matmul per conv: (Cout, 9*C) @ (9*C, L) -> (Cout, L).
        acc = jnp.dot(w_flat, slab, preferred_element_type=jnp.float32)
        return jnp.maximum(acc + b, 0.0)

    y1 = conv3x3_relu(x_ref[0], w1_ref[...], b1_ref[...])      # (Cmid, L)
    y2 = conv3x3_relu(y1, w2_ref[...], b2_ref[...])            # (Cmid, L)
    feat_ref[0] = y2.astype(feat_ref.dtype)                    # lane-dense store


def _pick_nb(N, HW):
    """Smallest divisor Nb of N with Nb*HW >= 128 lanes (else N)."""
    for nb in range(1, N + 1):
        if N % nb == 0 and nb * HW >= 128:
            return nb
    return N


def conv_block(x_nchw, w1, b1, w2, b2):
    """Fused Block forward.  x_nchw: (N, Cin, H, W) f32 -> (N, Cout, H, W)."""
    N, Cin, H, W = x_nchw.shape
    Cmid = w1.shape[-1]
    HW = H * W
    # TODO(synk): non power-of-two spatial dims need iota//W, %W index math.
    assert (H & (H - 1)) == 0 and (W & (W - 1)) == 0, "power-of-two H, W only"

    Nb = _pick_nb(N, HW)       # pack images so the lane dim stays >= 128 wide
    G = N // Nb
    L = Nb * HW

    # Rough per-step VMEM working set (double-buffered IO + im2col slabs).
    work_bytes = 4 * (2 * Cin * L + 2 * Cmid * L
                      + (9 * Cin + 9 * Cmid + 3 * Cmid) * L
                      + Cmid * 9 * (Cin + Cmid))
    assert work_bytes < 24 * 1024 * 1024, (
        "TODO(synk): tile H with a halo for large images (v7x has 64 MiB VMEM)")

    # Weights: HWIO (3,3,Ci,Co) -> (Co, 9*Ci), row order (kh*3+kw)*Ci + ci,
    # matching the in-kernel slab concatenation order.
    w1_flat = w1.reshape(9 * Cin, Cmid).T
    w2_flat = w2.reshape(9 * Cmid, Cmid).T
    b1_c = b1.reshape(Cmid, 1)
    b2_c = b2.reshape(Cmid, 1)

    x_flat = x_nchw.reshape(N, Cin, HW)
    if Nb > 1:
        # Pack Nb images along lanes: (G, Cin, Nb*HW), channel-major.
        x_in = x_flat.reshape(G, Nb, Cin, HW).transpose(0, 2, 1, 3).reshape(G, Cin, L)
    else:
        x_in = x_flat

    kern = partial(_block_kernel, H=H, W=W, L=L)
    out = pl.pallas_call(
        kern,
        out_shape=jax.ShapeDtypeStruct((G, Cmid, L), jnp.float32),
        grid=(G,),
        in_specs=[
            pl.BlockSpec((1, Cin, L), lambda g: (g, 0, 0)),
            pl.BlockSpec((Cmid, 9 * Cin), lambda g: (0, 0)),
            pl.BlockSpec((Cmid, 1), lambda g: (0, 0)),
            pl.BlockSpec((Cmid, 9 * Cmid), lambda g: (0, 0)),
            pl.BlockSpec((Cmid, 1), lambda g: (0, 0)),
        ],
        out_specs=pl.BlockSpec((1, Cmid, L), lambda g: (g, 0, 0)),
        compiler_params=pltpu.CompilerParams(
            dimension_semantics=("parallel",),
            vmem_limit_bytes=32 * 1024 * 1024),
    )(x_in, w1_flat, b1_c, w2_flat, b2_c)

    if Nb > 1:
        out = out.reshape(G, Cmid, Nb, HW).transpose(0, 2, 1, 3)
    return out.reshape(N, Cmid, H, W)


# --------------------------------------------------------------------------
# Encoder = [Block(in, out) for consecutive planes], 2x2 max-pool in between.
# --------------------------------------------------------------------------
def init_encoder_params(key, planes):
    """Deterministic params. torch Conv2d weight (O,I,3,3) stored here as HWIO."""
    params = []
    for cin, cout in zip(planes[:-1], planes[1:]):
        layer = []
        for ci, co in ((cin, cout), (cout, cout)):
            key, kw, kb = jax.random.split(key, 3)
            bound = 1.0 / jnp.sqrt(ci * 9.0)  # kaiming_uniform-style fan-in bound
            w = jax.random.uniform(kw, (3, 3, ci, co), jnp.float32, -bound, bound)
            b = jax.random.uniform(kb, (co,), jnp.float32, -bound, bound)
            layer += [w, b]
        params.append(tuple(layer))
    return params


def encoder_forward(x_nchw, params):
    """x_nchw: (N, C, H, W) float32.  Returns list of NCHW feature maps."""
    x = x_nchw
    feats = []
    for (w1, b1, w2, b2) in params:
        x = conv_block(x, w1, b1, w2, b2)   # fused conv1+relu+conv2+relu (Pallas)
        feats.append(x)
        # TODO(synk): fuse the 2x2 max-pool into the kernel epilogue (saves one
        # HBM round-trip of the feature map, biggest relative win on v5e).
        N, C, H, W = x.shape
        x = jnp.max(x.reshape(N, C, H // 2, 2, W // 2, 2), axis=(3, 5))
    return feats


# --------------------------------------------------------------------------
# Reference (pure JAX/XLA) for validating the Pallas path.
# --------------------------------------------------------------------------
def _ref_conv_relu(x, w, b):
    y = jax.lax.conv_general_dilated(
        x, w, window_strides=(1, 1), padding="SAME",
        dimension_numbers=("NCHW", "HWIO", "NCHW"))
    return jnp.maximum(y + b[None, :, None, None], 0.0)


def _ref_encoder(x_nchw, params):
    x = x_nchw
    feats = []
    for (w1, b1, w2, b2) in params:
        x = _ref_conv_relu(x, w1, b1)
        x = _ref_conv_relu(x, w2, b2)
        feats.append(x)
        N, C, H, W = x.shape
        x = jnp.max(x.reshape(N, C, H // 2, 2, W // 2, 2), axis=(3, 5))
    return feats


if __name__ == "__main__":
    planes = (4, 8, 16)          # two blocks: 4->8, 8->16
    key = jax.random.PRNGKey(0)
    key, kx = jax.random.split(key)
    x = jax.random.normal(kx, (2, 4, 16, 16), jnp.float32)  # NCHW like torch

    params = init_encoder_params(key, planes)

    fwd = jax.jit(encoder_forward)
    feats = fwd(x, params)
    feats = [jax.block_until_ready(f) for f in feats]

    # sanity: shapes match torch Encoder semantics (NCHW features)
    assert feats[0].shape == (2, 8, 16, 16), feats[0].shape
    assert feats[1].shape == (2, 16, 8, 8), feats[1].shape

    # numerical check against XLA reference
    ref_feats = _ref_encoder(x, params)
    for f, r in zip(feats, ref_feats):
        err = float(jnp.max(jnp.abs(f - r)))
        assert jnp.allclose(f, r, rtol=1e-3, atol=1e-3), err

    print("KERNEL_OK")
</pallas_src>

<mosaic_0001>
module attributes {stable_mosaic.version = 11 : i64} {
  func.func @_block_kernel(%arg0: i32, %arg1: memref<1x4x256xf32, #tpu.memory_space<vmem>>, %arg2: memref<8x36xf32, #tpu.memory_space<vmem>>, %arg3: memref<8x1xf32, #tpu.memory_space<vmem>>, %arg4: memref<8x72xf32, #tpu.memory_space<vmem>>, %arg5: memref<8x1xf32, #tpu.memory_space<vmem>>, %arg6: memref<1x8x256xf32, #tpu.memory_space<vmem>>) attributes {dimension_semantics = [#tpu.dimension_semantics<parallel>], iteration_bounds = array<i64: 2>, scalar_prefetch = 0 : i64, scratch_operands = 0 : i64, tpu.core_type = #tpu.core_type<tc>, window_params = [{transform_indices = @transform_0, window_bounds = array<i64: 1, 4, 256>}, {pipeline_mode = #tpu.pipeline_mode<synchronous>, transform_indices = @transform_1, window_bounds = array<i64: 8, 36>}, {pipeline_mode = #tpu.pipeline_mode<synchronous>, transform_indices = @transform_2, window_bounds = array<i64: 8, 1>}, {pipeline_mode = #tpu.pipeline_mode<synchronous>, transform_indices = @transform_3, window_bounds = array<i64: 8, 72>}, {pipeline_mode = #tpu.pipeline_mode<synchronous>, transform_indices = @transform_4, window_bounds = array<i64: 8, 1>}, {transform_indices = @transform_5, window_bounds = array<i64: 1, 8, 256>}]} {
    %c0 = arith.constant 0 : index
    %c0_0 = arith.constant 0 : index
    %c0_1 = arith.constant 0 : index
    %0 = vector.load %arg1[%c0, %c0_0, %c0_1] : memref<1x4x256xf32, #tpu.memory_space<vmem>>, vector<1x4x256xf32>
    %1 = vector.shape_cast %0 : vector<1x4x256xf32> to vector<4x256xf32>
    %c0_2 = arith.constant 0 : index
    %c0_3 = arith.constant 0 : index
    %2 = vector.load %arg2[%c0_2, %c0_3] : memref<8x36xf32, #tpu.memory_space<vmem>>, vector<8x36xf32>
    %c0_4 = arith.constant 0 : index
    %c0_5 = arith.constant 0 : index
    %3 = vector.load %arg3[%c0_4, %c0_5] : memref<8x1xf32, #tpu.memory_space<vmem>>, vector<8x1xf32>
    %4 = tpu.iota {dimensions = array<i32: 1>} : vector<4x256xi32>
    %c15_i32 = arith.constant 15 : i32
    %5 = vector.broadcast %c15_i32 : i32 to vector<4x256xi32>
    %6 = arith.andi %4, %5 : vector<4x256xi32>
    %c4_i32 = arith.constant 4 : i32
    %7 = vector.broadcast %c4_i32 : i32 to vector<4x256xi32>
    %8 = arith.shrsi %4, %7 : vector<4x256xi32>
    %c15_i32_6 = arith.constant 15 : i32
    %9 = vector.broadcast %c15_i32_6 : i32 to vector<4x256xi32>
    %10 = arith.andi %8, %9 : vector<4x256xi32>
    %c17_i32 = arith.constant 17 : i32
    %11 = tpu.dynamic_rotate %1 by %c17_i32 dim 1 : vector<4x256xf32>, i32 -> vector<4x256xf32>
    %c1_i32 = arith.constant 1 : i32
    %12 = vector.broadcast %c1_i32 : i32 to vector<4x256xi32>
    %13 = arith.cmpi sge, %10, %12 : vector<4x256xi32>
    %c1_i32_7 = arith.constant 1 : i32
    %14 = vector.broadcast %c1_i32_7 : i32 to vector<4x256xi32>
    %15 = arith.cmpi sge, %6, %14 : vector<4x256xi32>
    %16 = arith.andi %13, %15 : vector<4x256xi1>
    %cst = arith.constant 0.000000e+00 : f32
    %17 = vector.broadcast %cst : f32 to vector<4x256xf32>
    %18 = arith.select %16, %11, %17 : vector<4x256xi1>, vector<4x256xf32>
    %c16_i32 = arith.constant 16 : i32
    %19 = tpu.dynamic_rotate %1 by %c16_i32 dim 1 : vector<4x256xf32>, i32 -> vector<4x256xf32>
    %c1_i32_8 = arith.constant 1 : i32
    %20 = vector.broadcast %c1_i32_8 : i32 to vector<4x256xi32>
    %21 = arith.cmpi sge, %10, %20 : vector<4x256xi32>
    %cst_9 = arith.constant 0.000000e+00 : f32
    %22 = vector.broadcast %cst_9 : f32 to vector<4x256xf32>
    %23 = arith.select %21, %19, %22 : vector<4x256xi1>, vector<4x256xf32>
    %c15_i32_10 = arith.constant 15 : i32
    %24 = tpu.dynamic_rotate %1 by %c15_i32_10 dim 1 : vector<4x256xf32>, i32 -> vector<4x256xf32>
    %c1_i32_11 = arith.constant 1 : i32
    %25 = vector.broadcast %c1_i32_11 : i32 to vector<4x256xi32>
    %26 = arith.cmpi sge, %10, %25 : vector<4x256xi32>
    %c15_i32_12 = arith.constant 15 : i32
    %27 = vector.broadcast %c15_i32_12 : i32 to vector<4x256xi32>
    %28 = arith.cmpi slt, %6, %27 : vector<4x256xi32>
    %29 = arith.andi %26, %28 : vector<4x256xi1>
    %cst_13 = arith.constant 0.000000e+00 : f32
    %30 = vector.broadcast %cst_13 : f32 to vector<4x256xf32>
    %31 = arith.select %29, %24, %30 : vector<4x256xi1>, vector<4x256xf32>
    %c1_i32_14 = arith.constant 1 : i32
    %32 = tpu.dynamic_rotate %1 by %c1_i32_14 dim 1 : vector<4x256xf32>, i32 -> vector<4x256xf32>
    %c1_i32_15 = arith.constant 1 : i32
    %33 = vector.broadcast %c1_i32_15 : i32 to vector<4x256xi32>
    %34 = arith.cmpi sge, %6, %33 : vector<4x256xi32>
    %cst_16 = arith.constant 0.000000e+00 : f32
    %35 = vector.broadcast %cst_16 : f32 to vector<4x256xf32>
    %36 = arith.select %34, %32, %35 : vector<4x256xi1>, vector<4x256xf32>
    %c255_i32 = arith.constant 255 : i32
    %37 = tpu.dynamic_rotate %1 by %c255_i32 dim 1 : vector<4x256xf32>, i32 -> vector<4x256xf32>
    %c15_i32_17 = arith.constant 15 : i32
    %38 = vector.broadcast %c15_i32_17 : i32 to vector<4x256xi32>
    %39 = arith.cmpi slt, %6, %38 : vector<4x256xi32>
    %cst_18 = arith.constant 0.000000e+00 : f32
    %40 = vector.broadcast %cst_18 : f32 to vector<4x256xf32>
    %41 = arith.select %39, %37, %40 : vector<4x256xi1>, vector<4x256xf32>
    %c241_i32 = arith.constant 241 : i32
    %42 = tpu.dynamic_rotate %1 by %c241_i32 dim 1 : vector<4x256xf32>, i32 -> vector<4x256xf32>
    %c15_i32_19 = arith.constant 15 : i32
    %43 = vector.broadcast %c15_i32_19 : i32 to vector<4x256xi32>
    %44 = arith.cmpi slt, %10, %43 : vector<4x256xi32>
    %c1_i32_20 = arith.constant 1 : i32
    %45 = vector.broadcast %c1_i32_20 : i32 to vector<4x256xi32>
    %46 = arith.cmpi sge, %6, %45 : vector<4x256xi32>
    %47 = arith.andi %44, %46 : vector<4x256xi1>
    %cst_21 = arith.constant 0.000000e+00 : f32
    %48 = vector.broadcast %cst_21 : f32 to vector<4x256xf32>
    %49 = arith.select %47, %42, %48 : vector<4x256xi1>, vector<4x256xf32>
    %c240_i32 = arith.constant 240 : i32
    %50 = tpu.dynamic_rotate %1 by %c240_i32 dim 1 : vector<4x256xf32>, i32 -> vector<4x256xf32>
    %c15_i32_22 = arith.constant 15 : i32
    %51 = vector.broadcast %c15_i32_22 : i32 to vector<4x256xi32>
    %52 = arith.cmpi slt, %10, %51 : vector<4x256xi32>
    %cst_23 = arith.constant 0.000000e+00 : f32
    %53 = vector.broadcast %cst_23 : f32 to vector<4x256xf32>
    %54 = arith.select %52, %50, %53 : vector<4x256xi1>, vector<4x256xf32>
    %c239_i32 = arith.constant 239 : i32
    %55 = tpu.dynamic_rotate %1 by %c239_i32 dim 1 : vector<4x256xf32>, i32 -> vector<4x256xf32>
    %c15_i32_24 = arith.constant 15 : i32
    %56 = vector.broadcast %c15_i32_24 : i32 to vector<4x256xi32>
    %57 = arith.cmpi slt, %10, %56 : vector<4x256xi32>
    %c15_i32_25 = arith.constant 15 : i32
    %58 = vector.broadcast %c15_i32_25 : i32 to vector<4x256xi32>
    %59 = arith.cmpi slt, %6, %58 : vector<4x256xi32>
    %60 = arith.andi %57, %59 : vector<4x256xi1>
    %cst_26 = arith.constant 0.000000e+00 : f32
    %61 = vector.broadcast %cst_26 : f32 to vector<4x256xf32>
    %62 = arith.select %60, %55, %61 : vector<4x256xi1>, vector<4x256xf32>
    %63 = tpu.concatenate %18, %23, %31, %36, %1, %41, %49, %54, %62 in 0 : vector<4x256xf32>, vector<4x256xf32>, vector<4x256xf32>, vector<4x256xf32>, vector<4x256xf32>, vector<4x256xf32>, vector<4x256xf32>, vector<4x256xf32>, vector<4x256xf32> -> vector<36x256xf32>
    %cst_27 = arith.constant dense<0.000000e+00> : vector<8x256xf32>
    %64 = tpu.matmul %2, %63, %cst_27 {dimension_numbers = #tpu.dot_dimension_numbers<[1], [0], [0], [1], [0, 0, 1, 1], [], []>} : vector<8x36xf32>, vector<36x256xf32>, vector<8x256xf32> -> vector<8x256xf32>
    %65 = vector.broadcast %3 : vector<8x1xf32> to vector<8x256xf32>
    %66 = arith.addf %64, %65 : vector<8x256xf32>
    %cst_28 = arith.constant 0.000000e+00 : f32
    %67 = vector.broadcast %cst_28 : f32 to vector<8x256xf32>
    %68 = arith.maximumf %66, %67 : vector<8x256xf32>
    %c0_29 = arith.constant 0 : index
    %c0_30 = arith.constant 0 : index
    %69 = vector.load %arg4[%c0_29, %c0_30] : memref<8x72xf32, #tpu.memory_space<vmem>>, vector<8x72xf32>
    %c0_31 = arith.constant 0 : index
    %c0_32 = arith.constant 0 : index
    %70 = vector.load %arg5[%c0_31, %c0_32] : memref<8x1xf32, #tpu.memory_space<vmem>>, vector<8x1xf32>
    %71 = tpu.iota {dimensions = array<i32: 1>} : vector<8x256xi32>
    %c15_i32_33 = arith.constant 15 : i32
    %72 = vector.broadcast %c15_i32_33 : i32 to vector<8x256xi32>
    %73 = arith.andi %71, %72 : vector<8x256xi32>
    %c4_i32_34 = arith.constant 4 : i32
    %74 = vector.broadcast %c4_i32_34 : i32 to vector<8x256xi32>
    %75 = arith.shrsi %71, %74 : vector<8x256xi32>
    %c15_i32_35 = arith.constant 15 : i32
    %76 = vector.broadcast %c15_i32_35 : i32 to vector<8x256xi32>
    %77 = arith.andi %75, %76 : vector<8x256xi32>
    %c17_i32_36 = arith.constant 17 : i32
    %78 = tpu.dynamic_rotate %68 by %c17_i32_36 dim 1 : vector<8x256xf32>, i32 -> vector<8x256xf32>
    %c1_i32_37 = arith.constant 1 : i32
    %79 = vector.broadcast %c1_i32_37 : i32 to vector<8x256xi32>
    %80 = arith.cmpi sge, %77, %79 : vector<8x256xi32>
    %c1_i32_38 = arith.constant 1 : i32
    %81 = vector.broadcast %c1_i32_38 : i32 to vector<8x256xi32>
    %82 = arith.cmpi sge, %73, %81 : vector<8x256xi32>
    %83 = arith.andi %80, %82 : vector<8x256xi1>
    %cst_39 = arith.constant 0.000000e+00 : f32
    %84 = vector.broadcast %cst_39 : f32 to vector<8x256xf32>
    %85 = arith.select %83, %78, %84 : vector<8x256xi1>, vector<8x256xf32>
    %c16_i32_40 = arith.constant 16 : i32
    %86 = tpu.dynamic_rotate %68 by %c16_i32_40 dim 1 : vector<8x256xf32>, i32 -> vector<8x256xf32>
    %c1_i32_41 = arith.constant 1 : i32
    %87 = vector.broadcast %c1_i32_41 : i32 to vector<8x256xi32>
    %88 = arith.cmpi sge, %77, %87 : vector<8x256xi32>
    %cst_42 = arith.constant 0.000000e+00 : f32
    %89 = vector.broadcast %cst_42 : f32 to vector<8x256xf32>
    %90 = arith.select %88, %86, %89 : vector<8x256xi1>, vector<8x256xf32>
    %c15_i32_43 = arith.constant 15 : i32
    %91 = tpu.dynamic_rotate %68 by %c15_i32_43 dim 1 : vector<8x256xf32>, i32 -> vector<8x256xf32>
    %c1_i32_44 = arith.constant 1 : i32
    %92 = vector.broadcast %c1_i32_44 : i32 to vector<8x256xi32>
    %93 = arith.cmpi sge, %77, %92 : vector<8x256xi32>
    %c15_i32_45 = arith.constant 15 : i32
    %94 = vector.broadcast %c15_i32_45 : i32 to vector<8x256xi32>
    %95 = arith.cmpi slt, %73, %94 : vector<8x256xi32>
    %96 = arith.andi %93, %95 : vector<8x256xi1>
    %cst_46 = arith.constant 0.000000e+00 : f32
    %97 = vector.broadcast %cst_46 : f32 to vector<8x256xf32>
    %98 = arith.select %96, %91, %97 : vector<8x256xi1>, vector<8x256xf32>
    %c1_i32_47 = arith.constant 1 : i32
    %99 = tpu.dynamic_rotate %68 by %c1_i32_47 dim 1 : vector<8x256xf32>, i32 -> vector<8x256xf32>
    %c1_i32_48 = arith.constant 1 : i32
    %100 = vector.broadcast %c1_i32_48 : i32 to vector<8x256xi32>
    %101 = arith.cmpi sge, %73, %100 : vector<8x256xi32>
    %cst_49 = arith.constant 0.000000e+00 : f32
    %102 = vector.broadcast %cst_49 : f32 to vector<8x256xf32>
    %103 = arith.select %101, %99, %102 : vector<8x256xi1>, vector<8x256xf32>
    %c255_i32_50 = arith.constant 255 : i32
    %104 = tpu.dynamic_rotate %68 by %c255_i32_50 dim 1 : vector<8x256xf32>, i32 -> vector<8x256xf32>
    %c15_i32_51 = arith.constant 15 : i32
    %105 = vector.broadcast %c15_i32_51 : i32 to vector<8x256xi32>
    %106 = arith.cmpi slt, %73, %105 : vector<8x256xi32>
    %cst_52 = arith.constant 0.000000e+00 : f32
    %107 = vector.broadcast %cst_52 : f32 to vector<8x256xf32>
    %108 = arith.select %106, %104, %107 : vector<8x256xi1>, vector<8x256xf32>
    %c241_i32_53 = arith.constant 241 : i32
    %109 = tpu.dynamic_rotate %68 by %c241_i32_53 dim 1 : vector<8x256xf32>, i32 -> vector<8x256xf32>
    %c15_i32_54 = arith.constant 15 : i32
    %110 = vector.broadcast %c15_i32_54 : i32 to vector<8x256xi32>
    %111 = arith.cmpi slt, %77, %110 : vector<8x256xi32>
    %c1_i32_55 = arith.constant 1 : i32
    %112 = vector.broadcast %c1_i32_55 : i32 to vector<8x256xi32>
    %113 = arith.cmpi sge, %73, %112 : vector<8x256xi32>
    %114 = arith.andi %111, %113 : vector<8x256xi1>
    %cst_56 = arith.constant 0.000000e+00 : f32
    %115 = vector.broadcast %cst_56 : f32 to vector<8x256xf32>
    %116 = arith.select %114, %109, %115 : vector<8x256xi1>, vector<8x256xf32>
    %c240_i32_57 = arith.constant 240 : i32
    %117 = tpu.dynamic_rotate %68 by %c240_i32_57 dim 1 : vector<8x256xf32>, i32 -> vector<8x256xf32>
    %c15_i32_58 = arith.constant 15 : i32
    %118 = vector.broadcast %c15_i32_58 : i32 to vector<8x256xi32>
    %119 = arith.cmpi slt, %77, %118 : vector<8x256xi32>
    %cst_59 = arith.constant 0.000000e+00 : f32
    %120 = vector.broadcast %cst_59 : f32 to vector<8x256xf32>
    %121 = arith.select %119, %117, %120 : vector<8x256xi1>, vector<8x256xf32>
    %c239_i32_60 = arith.constant 239 : i32
    %122 = tpu.dynamic_rotate %68 by %c239_i32_60 dim 1 : vector<8x256xf32>, i32 -> vector<8x256xf32>
    %c15_i32_61 = arith.constant 15 : i32
    %123 = vector.broadcast %c15_i32_61 : i32 to vector<8x256xi32>
    %124 = arith.cmpi slt, %77, %123 : vector<8x256xi32>
    %c15_i32_62 = arith.constant 15 : i32
    %125 = vector.broadcast %c15_i32_62 : i32 to vector<8x256xi32>
    %126 = arith.cmpi slt, %73, %125 : vector<8x256xi32>
    %127 = arith.andi %124, %126 : vector<8x256xi1>
    %cst_63 = arith.constant 0.000000e+00 : f32
    %128 = vector.broadcast %cst_63 : f32 to vector<8x256xf32>
    %129 = arith.select %127, %122, %128 : vector<8x256xi1>, vector<8x256xf32>
    %130 = tpu.concatenate %85, %90, %98, %103, %68, %108, %116, %121, %129 in 0 : vector<8x256xf32>, vector<8x256xf32>, vector<8x256xf32>, vector<8x256xf32>, vector<8x256xf32>, vector<8x256xf32>, vector<8x256xf32>, vector<8x256xf32>, vector<8x256xf32> -> vector<72x256xf32>
    %cst_64 = arith.constant dense<0.000000e+00> : vector<8x256xf32>
    %131 = tpu.matmul %69, %130, %cst_64 {dimension_numbers = #tpu.dot_dimension_numbers<[1], [0], [0], [1], [0, 0, 1, 1], [], []>} : vector<8x72xf32>, vector<72x256xf32>, vector<8x256xf32> -> vector<8x256xf32>
    %132 = vector.broadcast %70 : vector<8x1xf32> to vector<8x256xf32>
    %133 = arith.addf %131, %132 : vector<8x256xf32>
    %cst_65 = arith.constant 0.000000e+00 : f32
    %134 = vector.broadcast %cst_65 : f32 to vector<8x256xf32>
    %135 = arith.maximumf %133, %134 : vector<8x256xf32>
    %c0_66 = arith.constant 0 : index
    %c0_67 = arith.constant 0 : index
    %c0_68 = arith.constant 0 : index
    %136 = vector.load %arg6[%c0_66, %c0_67, %c0_68] : memref<1x8x256xf32, #tpu.memory_space<vmem>>, vector<1x8x256xf32>
    %137 = vector.shape_cast %136 : vector<1x8x256xf32> to vector<8x256xf32>
    %138 = vector.shape_cast %135 : vector<8x256xf32> to vector<1x8x256xf32>
    tpu.vector_store %arg6[%c0_66, %c0_67, %c0_68], %138 {strides = array<i32>} : memref<1x8x256xf32, #tpu.memory_space<vmem>>, vector<1x8x256xf32>,
    return
  }
  func.func @transform_0(%arg0: i32) -> (i32, i32, i32) {
    %c0_i32 = arith.constant 0 : i32
    %c0_i32_0 = arith.constant 0 : i32
    %c0_i32_1 = arith.constant 0 : i32
    return %arg0, %c0_i32, %c0_i32_0 : i32, i32, i32
  }
  func.func @transform_1(%arg0: i32) -> (i32, i32) {
    %c0_i32 = arith.constant 0 : i32
    %c0_i32_0 = arith.constant 0 : i32
    %c0_i32_1 = arith.constant 0 : i32
    return %c0_i32, %c0_i32_0 : i32, i32
  }
  func.func @transform_2(%arg0: i32) -> (i32, i32) {
    %c0_i32 = arith.constant 0 : i32
    %c0_i32_0 = arith.constant 0 : i32
    %c0_i32_1 = arith.constant 0 : i32
    return %c0_i32, %c0_i32_0 : i32, i32
  }
  func.func @transform_3(%arg0: i32) -> (i32, i32) {
    %c0_i32 = arith.constant 0 : i32
    %c0_i32_0 = arith.constant 0 : i32
    %c0_i32_1 = arith.constant 0 : i32
    return %c0_i32, %c0_i32_0 : i32, i32
  }
  func.func @transform_4(%arg0: i32) -> (i32, i32) {
    %c0_i32 = arith.constant 0 : i32
    %c0_i32_0 = arith.constant 0 : i32
    %c0_i32_1 = arith.constant 0 : i32
    return %c0_i32, %c0_i32_0 : i32, i32
  }
  func.func @transform_5(%arg0: i32) -> (i32, i32, i32) {
    %c0_i32 = arith.constant 0 : i32
    %c0_i32_0 = arith.constant 0 : i32
    %c0_i32_1 = arith.constant 0 : i32
    return %arg0, %c0_i32, %c0_i32_0 : i32, i32, i32
  }
}

module attributes {stable_mosaic.version = 11 : i64} {
  func.func @_block_kernel(%arg0: i32, %arg1: memref<1x8x128xf32, #tpu.memory_space<vmem>>, %arg2: memref<16x72xf32, #tpu.memory_space<vmem>>, %arg3: memref<16x1xf32, #tpu.memory_space<vmem>>, %arg4: memref<16x144xf32, #tpu.memory_space<vmem>>, %arg5: memref<16x1xf32, #tpu.memory_space<vmem>>, %arg6: memref<1x16x128xf32, #tpu.memory_space<vmem>>) attributes {dimension_semantics = [#tpu.dimension_semantics<parallel>], iteration_bounds = array<i64: 1>, scalar_prefetch = 0 : i64, scratch_operands = 0 : i64, tpu.core_type = #tpu.core_type<tc>, window_params = [{transform_indices = @transform_0, window_bounds = array<i64: 1, 8, 128>}, {pipeline_mode = #tpu.pipeline_mode<synchronous>, transform_indices = @transform_1, window_bounds = array<i64: 16, 72>}, {pipeline_mode = #tpu.pipeline_mode<synchronous>, transform_indices = @transform_2, window_bounds = array<i64: 16, 1>}, {pipeline_mode = #tpu.pipeline_mode<synchronous>, transform_indices = @transform_3, window_bounds = array<i64: 16, 144>}, {pipeline_mode = #tpu.pipeline_mode<synchronous>, transform_indices = @transform_4, window_bounds = array<i64: 16, 1>}, {transform_indices = @transform_5, window_bounds = array<i64: 1, 16, 128>}]} {
    %c0 = arith.constant 0 : index
    %c0_0 = arith.constant 0 : index
    %c0_1 = arith.constant 0 : index
    %0 = vector.load %arg1[%c0, %c0_0, %c0_1] : memref<1x8x128xf32, #tpu.memory_space<vmem>>, vector<1x8x128xf32>
    %1 = vector.shape_cast %0 : vector<1x8x128xf32> to vector<8x128xf32>
    %c0_2 = arith.constant 0 : index
    %c0_3 = arith.constant 0 : index
    %2 = vector.load %arg2[%c0_2, %c0_3] : memref<16x72xf32, #tpu.memory_space<vmem>>, vector<16x72xf32>
    %c0_4 = arith.constant 0 : index
    %c0_5 = arith.constant 0 : index
    %3 = vector.load %arg3[%c0_4, %c0_5] : memref<16x1xf32, #tpu.memory_space<vmem>>, vector<16x1xf32>
    %4 = tpu.iota {dimensions = array<i32: 1>} : vector<8x128xi32>
    %c7_i32 = arith.constant 7 : i32
    %5 = vector.broadcast %c7_i32 : i32 to vector<8x128xi32>
    %6 = arith.andi %4, %5 : vector<8x128xi32>
    %c3_i32 = arith.constant 3 : i32
    %7 = vector.broadcast %c3_i32 : i32 to vector<8x128xi32>
    %8 = arith.shrsi %4, %7 : vector<8x128xi32>
    %c7_i32_6 = arith.constant 7 : i32
    %9 = vector.broadcast %c7_i32_6 : i32 to vector<8x128xi32>
    %10 = arith.andi %8, %9 : vector<8x128xi32>
    %c9_i32 = arith.constant 9 : i32
    %11 = tpu.dynamic_rotate %1 by %c9_i32 dim 1 : vector<8x128xf32>, i32 -> vector<8x128xf32>
    %c1_i32 = arith.constant 1 : i32
    %12 = vector.broadcast %c1_i32 : i32 to vector<8x128xi32>
    %13 = arith.cmpi sge, %10, %12 : vector<8x128xi32>
    %c1_i32_7 = arith.constant 1 : i32
    %14 = vector.broadcast %c1_i32_7 : i32 to vector<8x128xi32>
    %15 = arith.cmpi sge, %6, %14 : vector<8x128xi32>
    %16 = arith.andi %13, %15 : vector<8x128xi1>
    %cst = arith.constant 0.000000e+00 : f32
    %17 = vector.broadcast %cst : f32 to vector<8x128xf32>
    %18 = arith.select %16, %11, %17 : vector<8x128xi1>, vector<8x128xf32>
    %c8_i32 = arith.constant 8 : i32
    %19 = tpu.dynamic_rotate %1 by %c8_i32 dim 1 : vector<8x128xf32>, i32 -> vector<8x128xf32>
    %c1_i32_8 = arith.constant 1 : i32
    %20 = vector.broadcast %c1_i32_8 : i32 to vector<8x128xi32>
    %21 = arith.cmpi sge, %10, %20 : vector<8x128xi32>
    %cst_9 = arith.constant 0.000000e+00 : f32
    %22 = vector.broadcast %cst_9 : f32 to vector<8x128xf32>
    %23 = arith.select %21, %19, %22 : vector<8x128xi1>, vector<8x128xf32>
    %c7_i32_10 = arith.constant 7 : i32
    %24 = tpu.dynamic_rotate %1 by %c7_i32_10 dim 1 : vector<8x128xf32>, i32 -> vector<8x128xf32>
    %c1_i32_11 = arith.constant 1 : i32
    %25 = vector.broadcast %c1_i32_11 : i32 to vector<8x128xi32>
    %26 = arith.cmpi sge, %10, %25 : vector<8x128xi32>
    %c7_i32_12 = arith.constant 7 : i32
    %27 = vector.broadcast %c7_i32_12 : i32 to vector<8x128xi32>
    %28 = arith.cmpi slt, %6, %27 : vector<8x128xi32>
    %29 = arith.andi %26, %28 : vector<8x128xi1>
    %cst_13 = arith.constant 0.000000e+00 : f32
    %30 = vector.broadcast %cst_13 : f32 to vector<8x128xf32>
    %31 = arith.select %29, %24, %30 : vector<8x128xi1>, vector<8x128xf32>
    %c1_i32_14 = arith.constant 1 : i32
    %32 = tpu.dynamic_rotate %1 by %c1_i32_14 dim 1 : vector<8x128xf32>, i32 -> vector<8x128xf32>
    %c1_i32_15 = arith.constant 1 : i32
    %33 = vector.broadcast %c1_i32_15 : i32 to vector<8x128xi32>
    %34 = arith.cmpi sge, %6, %33 : vector<8x128xi32>
    %cst_16 = arith.constant 0.000000e+00 : f32
    %35 = vector.broadcast %cst_16 : f32 to vector<8x128xf32>
    %36 = arith.select %34, %32, %35 : vector<8x128xi1>, vector<8x128xf32>
    %c127_i32 = arith.constant 127 : i32
    %37 = tpu.dynamic_rotate %1 by %c127_i32 dim 1 : vector<8x128xf32>, i32 -> vector<8x128xf32>
    %c7_i32_17 = arith.constant 7 : i32
    %38 = vector.broadcast %c7_i32_17 : i32 to vector<8x128xi32>
    %39 = arith.cmpi slt, %6, %38 : vector<8x128xi32>
    %cst_18 = arith.constant 0.000000e+00 : f32
    %40 = vector.broadcast %cst_18 : f32 to vector<8x128xf32>
    %41 = arith.select %39, %37, %40 : vector<8x128xi1>, vector<8x128xf32>
    %c121_i32 = arith.constant 121 : i32
    %42 = tpu.dynamic_rotate %1 by %c121_i32 dim 1 : vector<8x128xf32>, i32 -> vector<8x128xf32>
    %c7_i32_19 = arith.constant 7 : i32
    %43 = vector.broadcast %c7_i32_19 : i32 to vector<8x128xi32>
    %44 = arith.cmpi slt, %10, %43 : vector<8x128xi32>
    %c1_i32_20 = arith.constant 1 : i32
    %45 = vector.broadcast %c1_i32_20 : i32 to vector<8x128xi32>
    %46 = arith.cmpi sge, %6, %45 : vector<8x128xi32>
    %47 = arith.andi %44, %46 : vector<8x128xi1>
    %cst_21 = arith.constant 0.000000e+00 : f32
    %48 = vector.broadcast %cst_21 : f32 to vector<8x128xf32>
    %49 = arith.select %47, %42, %48 : vector<8x128xi1>, vector<8x128xf32>
    %c120_i32 = arith.constant 120 : i32
    %50 = tpu.dynamic_rotate %1 by %c120_i32 dim 1 : vector<8x128xf32>, i32 -> vector<8x128xf32>
    %c7_i32_22 = arith.constant 7 : i32
    %51 = vector.broadcast %c7_i32_22 : i32 to vector<8x128xi32>
    %52 = arith.cmpi slt, %10, %51 : vector<8x128xi32>
    %cst_23 = arith.constant 0.000000e+00 : f32
    %53 = vector.broadcast %cst_23 : f32 to vector<8x128xf32>
    %54 = arith.select %52, %50, %53 : vector<8x128xi1>, vector<8x128xf32>
    %c119_i32 = arith.constant 119 : i32
    %55 = tpu.dynamic_rotate %1 by %c119_i32 dim 1 : vector<8x128xf32>, i32 -> vector<8x128xf32>
    %c7_i32_24 = arith.constant 7 : i32
    %56 = vector.broadcast %c7_i32_24 : i32 to vector<8x128xi32>
    %57 = arith.cmpi slt, %10, %56 : vector<8x128xi32>
    %c7_i32_25 = arith.constant 7 : i32
    %58 = vector.broadcast %c7_i32_25 : i32 to vector<8x128xi32>
    %59 = arith.cmpi slt, %6, %58 : vector<8x128xi32>
    %60 = arith.andi %57, %59 : vector<8x128xi1>
    %cst_26 = arith.constant 0.000000e+00 : f32
    %61 = vector.broadcast %cst_26 : f32 to vector<8x128xf32>
    %62 = arith.select %60, %55, %61 : vector<8x128xi1>, vector<8x128xf32>
    %63 = tpu.concatenate %18, %23, %31, %36, %1, %41, %49, %54, %62 in 0 : vector<8x128xf32>, vector<8x128xf32>, vector<8x128xf32>, vector<8x128xf32>, vector<8x128xf32>, vector<8x128xf32>, vector<8x128xf32>, vector<8x128xf32>, vector<8x128xf32> -> vector<72x128xf32>
    %cst_27 = arith.constant dense<0.000000e+00> : vector<16x128xf32>
    %64 = tpu.matmul %2, %63, %cst_27 {dimension_numbers = #tpu.dot_dimension_numbers<[1], [0], [0], [1], [0, 0, 1, 1], [], []>} : vector<16x72xf32>, vector<72x128xf32>, vector<16x128xf32> -> vector<16x128xf32>
    %65 = vector.broadcast %3 : vector<16x1xf32> to vector<16x128xf32>
    %66 = arith.addf %64, %65 : vector<16x128xf32>
    %cst_28 = arith.constant 0.000000e+00 : f32
    %67 = vector.broadcast %cst_28 : f32 to vector<16x128xf32>
    %68 = arith.maximumf %66, %67 : vector<16x128xf32>
    %c0_29 = arith.constant 0 : index
    %c0_30 = arith.constant 0 : index
    %69 = vector.load %arg4[%c0_29, %c0_30] : memref<16x144xf32, #tpu.memory_space<vmem>>, vector<16x144xf32>
    %c0_31 = arith.constant 0 : index
    %c0_32 = arith.constant 0 : index
    %70 = vector.load %arg5[%c0_31, %c0_32] : memref<16x1xf32, #tpu.memory_space<vmem>>, vector<16x1xf32>
    %71 = tpu.iota {dimensions = array<i32: 1>} : vector<16x128xi32>
    %c7_i32_33 = arith.constant 7 : i32
    %72 = vector.broadcast %c7_i32_33 : i32 to vector<16x128xi32>
    %73 = arith.andi %71, %72 : vector<16x128xi32>
    %c3_i32_34 = arith.constant 3 : i32
    %74 = vector.broadcast %c3_i32_34 : i32 to vector<16x128xi32>
    %75 = arith.shrsi %71, %74 : vector<16x128xi32>
    %c7_i32_35 = arith.constant 7 : i32
    %76 = vector.broadcast %c7_i32_35 : i32 to vector<16x128xi32>
    %77 = arith.andi %75, %76 : vector<16x128xi32>
    %c9_i32_36 = arith.constant 9 : i32
    %78 = tpu.dynamic_rotate %68 by %c9_i32_36 dim 1 : vector<16x128xf32>, i32 -> vector<16x128xf32>
    %c1_i32_37 = arith.constant 1 : i32
    %79 = vector.broadcast %c1_i32_37 : i32 to vector<16x128xi32>
    %80 = arith.cmpi sge, %77, %79 : vector<16x128xi32>
    %c1_i32_38 = arith.constant 1 : i32
    %81 = vector.broadcast %c1_i32_38 : i32 to vector<16x128xi32>
    %82 = arith.cmpi sge, %73, %81 : vector<16x128xi32>
    %83 = arith.andi %80, %82 : vector<16x128xi1>
    %cst_39 = arith.constant 0.000000e+00 : f32
    %84 = vector.broadcast %cst_39 : f32 to vector<16x128xf32>
    %85 = arith.select %83, %78, %84 : vector<16x128xi1>, vector<16x128xf32>
    %c8_i32_40 = arith.constant 8 : i32
    %86 = tpu.dynamic_rotate %68 by %c8_i32_40 dim 1 : vector<16x128xf32>, i32 -> vector<16x128xf32>
    %c1_i32_41 = arith.constant 1 : i32
    %87 = vector.broadcast %c1_i32_41 : i32 to vector<16x128xi32>
    %88 = arith.cmpi sge, %77, %87 : vector<16x128xi32>
    %cst_42 = arith.constant 0.000000e+00 : f32
    %89 = vector.broadcast %cst_42 : f32 to vector<16x128xf32>
    %90 = arith.select %88, %86, %89 : vector<16x128xi1>, vector<16x128xf32>
    %c7_i32_43 = arith.constant 7 : i32
    %91 = tpu.dynamic_rotate %68 by %c7_i32_43 dim 1 : vector<16x128xf32>, i32 -> vector<16x128xf32>
    %c1_i32_44 = arith.constant 1 : i32
    %92 = vector.broadcast %c1_i32_44 : i32 to vector<16x128xi32>
    %93 = arith.cmpi sge, %77, %92 : vector<16x128xi32>
    %c7_i32_45 = arith.constant 7 : i32
    %94 = vector.broadcast %c7_i32_45 : i32 to vector<16x128xi32>
    %95 = arith.cmpi slt, %73, %94 : vector<16x128xi32>
    %96 = arith.andi %93, %95 : vector<16x128xi1>
    %cst_46 = arith.constant 0.000000e+00 : f32
    %97 = vector.broadcast %cst_46 : f32 to vector<16x128xf32>
    %98 = arith.select %96, %91, %97 : vector<16x128xi1>, vector<16x128xf32>
    %c1_i32_47 = arith.constant 1 : i32
    %99 = tpu.dynamic_rotate %68 by %c1_i32_47 dim 1 : vector<16x128xf32>, i32 -> vector<16x128xf32>
    %c1_i32_48 = arith.constant 1 : i32
    %100 = vector.broadcast %c1_i32_48 : i32 to vector<16x128xi32>
    %101 = arith.cmpi sge, %73, %100 : vector<16x128xi32>
    %cst_49 = arith.constant 0.000000e+00 : f32
    %102 = vector.broadcast %cst_49 : f32 to vector<16x128xf32>
    %103 = arith.select %101, %99, %102 : vector<16x128xi1>, vector<16x128xf32>
    %c127_i32_50 = arith.constant 127 : i32
    %104 = tpu.dynamic_rotate %68 by %c127_i32_50 dim 1 : vector<16x128xf32>, i32 -> vector<16x128xf32>
    %c7_i32_51 = arith.constant 7 : i32
    %105 = vector.broadcast %c7_i32_51 : i32 to vector<16x128xi32>
    %106 = arith.cmpi slt, %73, %105 : vector<16x128xi32>
    %cst_52 = arith.constant 0.000000e+00 : f32
    %107 = vector.broadcast %cst_52 : f32 to vector<16x128xf32>
    %108 = arith.select %106, %104, %107 : vector<16x128xi1>, vector<16x128xf32>
    %c121_i32_53 = arith.constant 121 : i32
    %109 = tpu.dynamic_rotate %68 by %c121_i32_53 dim 1 : vector<16x128xf32>, i32 -> vector<16x128xf32>
    %c7_i32_54 = arith.constant 7 : i32
    %110 = vector.broadcast %c7_i32_54 : i32 to vector<16x128xi32>
    %111 = arith.cmpi slt, %77, %110 : vector<16x128xi32>
    %c1_i32_55 = arith.constant 1 : i32
    %112 = vector.broadcast %c1_i32_55 : i32 to vector<16x128xi32>
    %113 = arith.cmpi sge, %73, %112 : vector<16x128xi32>
    %114 = arith.andi %111, %113 : vector<16x128xi1>
    %cst_56 = arith.constant 0.000000e+00 : f32
    %115 = vector.broadcast %cst_56 : f32 to vector<16x128xf32>
    %116 = arith.select %114, %109, %115 : vector<16x128xi1>, vector<16x128xf32>
    %c120_i32_57 = arith.constant 120 : i32
    %117 = tpu.dynamic_rotate %68 by %c120_i32_57 dim 1 : vector<16x128xf32>, i32 -> vector<16x128xf32>
    %c7_i32_58 = arith.constant 7 : i32
    %118 = vector.broadcast %c7_i32_58 : i32 to vector<16x128xi32>
    %119 = arith.cmpi slt, %77, %118 : vector<16x128xi32>
    %cst_59 = arith.constant 0.000000e+00 : f32
    %120 = vector.broadcast %cst_59 : f32 to vector<16x128xf32>
    %121 = arith.select %119, %117, %120 : vector<16x128xi1>, vector<16x128xf32>
    %c119_i32_60 = arith.constant 119 : i32
    %122 = tpu.dynamic_rotate %68 by %c119_i32_60 dim 1 : vector<16x128xf32>, i32 -> vector<16x128xf32>
    %c7_i32_61 = arith.constant 7 : i32
    %123 = vector.broadcast %c7_i32_61 : i32 to vector<16x128xi32>
    %124 = arith.cmpi slt, %77, %123 : vector<16x128xi32>
    %c7_i32_62 = arith.constant 7 : i32
    %125 = vector.broadcast %c7_i32_62 : i32 to vector<16x128xi32>
    %126 = arith.cmpi slt, %73, %125 : vector<16x128xi32>
    %127 = arith.andi %124, %126 : vector<16x128xi1>
    %cst_63 = arith.constant 0.000000e+00 : f32
    %128 = vector.broadcast %cst_63 : f32 to vector<16x128xf32>
    %129 = arith.select %127, %122, %128 : vector<16x128xi1>, vector<16x128xf32>
    %130 = tpu.concatenate %85, %90, %98, %103, %68, %108, %116, %121, %129 in 0 : vector<16x128xf32>, vector<16x128xf32>, vector<16x128xf32>, vector<16x128xf32>, vector<16x128xf32>, vector<16x128xf32>, vector<16x128xf32>, vector<16x128xf32>, vector<16x128xf32> -> vector<144x128xf32>
    %cst_64 = arith.constant dense<0.000000e+00> : vector<16x128xf32>
    %131 = tpu.matmul %69, %130, %cst_64 {dimension_numbers = #tpu.dot_dimension_numbers<[1], [0], [0], [1], [0, 0, 1, 1], [], []>} : vector<16x144xf32>, vector<144x128xf32>, vector<16x128xf32> -> vector<16x128xf32>
    %132 = vector.broadcast %70 : vector<16x1xf32> to vector<16x128xf32>
    %133 = arith.addf %131, %132 : vector<16x128xf32>
    %cst_65 = arith.constant 0.000000e+00 : f32
    %134 = vector.broadcast %cst_65 : f32 to vector<16x128xf32>
    %135 = arith.maximumf %133, %134 : vector<16x128xf32>
    %c0_66 = arith.constant 0 : index
    %c0_67 = arith.constant 0 : index
    %c0_68 = arith.constant 0 : index
    %136 = vector.load %arg6[%c0_66, %c0_67, %c0_68] : memref<1x16x128xf32, #tpu.memory_space<vmem>>, vector<1x16x128xf32>
    %137 = vector.shape_cast %136 : vector<1x16x128xf32> to vector<16x128xf32>
    %138 = vector.shape_cast %135 : vector<16x128xf32> to vector<1x16x128xf32>
    tpu.vector_store %arg6[%c0_66, %c0_67, %c0_68], %138 {strides = array<i32>} : memref<1x16x128xf32, #tpu.memory_space<vmem>>, vector<1x16x128xf32>,
    return
  }
  func.func @transform_0(%arg0: i32) -> (i32, i32, i32) {
    %c0_i32 = arith.constant 0 : i32
    %c0_i32_0 = arith.constant 0 : i32
    %c0_i32_1 = arith.constant 0 : i32
    return %arg0, %c0_i32, %c0_i32_0 : i32, i32, i32
  }
  func.func @transform_1(%arg0: i32) -> (i32, i32) {
    %c0_i32 = arith.constant 0 : i32
    %c0_i32_0 = arith.constant 0 : i32
    %c0_i32_1 = arith.constant 0 : i32
    return %c0_i32, %c0_i32_0 : i32, i32
  }
  func.func @transform_2(%arg0: i32) -> (i32, i32) {
    %c0_i32 = arith.constant 0 : i32
    %c0_i32_0 = arith.constant 0 : i32
    %c0_i32_1 = arith.constant 0 : i32
    return %c0_i32, %c0_i32_0 : i32, i32
  }
  func.func @transform_3(%arg0: i32) -> (i32, i32) {
    %c0_i32 = arith.constant 0 : i32
    %c0_i32_0 = arith.constant 0 : i32
    %c0_i32_1 = arith.constant 0 : i32
    return %c0_i32, %c0_i32_0 : i32, i32
  }
  func.func @transform_4(%arg0: i32) -> (i32, i32) {
    %c0_i32 = arith.constant 0 : i32
    %c0_i32_0 = arith.constant 0 : i32
    %c0_i32_1 = arith.constant 0 : i32
    return %c0_i32, %c0_i32_0 : i32, i32
  }
  func.func @transform_5(%arg0: i32) -> (i32, i32, i32) {
    %c0_i32 = arith.constant 0 : i32
    %c0_i32_0 = arith.constant 0 : i32
    %c0_i32_1 = arith.constant 0 : i32
    return %arg0, %c0_i32, %c0_i32_0 : i32, i32, i32
  }
}

</mosaic_0001>

<bundles_post_ra>
// kernel: encoder_forward.3
= control target key start
LH: loop header
LB: loop body
LE: loop exit
PB: predicated region body
PF: predicated region fallthrough
CT: control target
= control target key end

     0   :  { %s482_s20 = smov 7   ;;  %s483_s21 = smov 9   ;;  %vm72_vm0 = vcmask 588800   ;;  %v490_v2 = vmov 0   ;;  %v25_v5 = vlaneseq  ;;  %vm491_vm9 = vmmov 1   ;;  %s677_s0 = inlined_call_operand.vmem [shape: f32[1,8,128], index: 0, kind: input, shape index: {}]   ;;  %s678_s1 = inlined_call_operand.vmem [shape: f32[16,72], index: 1, kind: input, shape index: {}]   ;;  %s679_s2 = inlined_call_operand.vmem [shape: f32[16,1], index: 2, kind: input, shape index: {}]   ;;  %s680_s4 = inlined_call_operand.vmem [shape: f32[16,1], index: 4, kind: input, shape index: {}]   ;;  %s681_s3 = inlined_call_operand.vmem [shape: f32[16,144], index: 3, kind: input, shape index: {}]   ;;  %s682_s5 = inlined_call_operand.vmem [shape: f32[1,16,128], index: 5, kind: output, shape index: {}]  }
   0x1   :  { %v20_v0 = vld [vmem:[%s677_s0] sm:$0xff]  ;;  %s484_s22 = smov 1   ;;  %s485_s23 = smov 8   ;;  %441 = vset.pattern.permute.xlu1 %v490_v2  ;;  %440 = vset.pattern.permute.xlu0 %v490_v2  ;;  %v24_v3 = vld [vmem:[%s679_s2 + $0x8] sm:$0xff]  ;;  %v492_v30 = vmov 0.0|0.0   ;;  %vm220_vm14 = vcmask 130048  }
   0x2   :  { %39 = vrot.lane.b32.xlu1 %v20_v0, %s482_s20  ;;  %30 = vrot.lane.b32.xlu0 %v20_v0, %s483_s21  ;;  %s486_s24 = smov 127   ;;  %s487_s25 = smov 121   ;;  %v21_v1 = vld [vmem:[%s678_s1] sm:$0xff]  ;;  %v26_v6 = vand.u32 127, %v25_v5  ;;  %v22_v28 = vld [vmem:[%s678_s1 + $0x8] sm:$0xff] }
   0x3   :  { %367 = vmatprep.mubr.msk.f32.mxu0 %vm72_vm0, %v21_v1  ;;  %s488_s27 = smov 120   ;;  %s489_s28 = smov 119   ;;  %v23_v4 = vld [vmem:[%s679_s2] sm:$0xff]  ;;  %394 = vmatprep.subr.bf16.mxu1 %v492_v30  ;;  %v161_v40 = vld [vmem:[%s680_s4 + $0x8] sm:$0xff]  ;;  %v158_v13 = vld [vmem:[%s681_s3 + $0x10] sm:$0xff] }
   0x4   :  { %v28_v7 = vshra.s32 %v26_v6, 3  ;;  %v27_v8 = vand.u32 7, %v26_v6  ;;  %v160_v41 = vld [vmem:[%s680_s4] sm:$0xff]  ;;  %v157_v42 = vld [vmem:[%s681_s3 + $0x8] sm:$0xff] }
   0x5   :  { %336 = vmatprep.mubr.msk.f32.mxu1 %vm220_vm14, %v157_v42 }
   0x6   :  { %44 = vrot.lane.b32.xlu1 %v20_v0, %s484_s22  ;;  %36 = vrot.lane.b32.xlu0 %v20_v0, %s485_s23  ;;  %v544_v9 = vand.u32 7, %v28_v7  ;;  %vm547_vm2 = vcmp.ge.s32.totalorder %v27_v8, 1  ;;  %vm551_vm3 = vcmp.lt.s32.totalorder %v27_v8, 7 }
   0x7   :  { %vm383_vm10 = vmpackc.low %vm551_vm3, %vm491_vm9 }
   0x8   :  { %vm32_vm1 = vcmp.ge.s32.totalorder %v544_v9, 1  ;;  %vm52_vm8 = vcmp.lt.s32.totalorder %v544_v9, 7  ;;  %v159_v9 = vld [vmem:[%s681_s3 + $0x18] sm:$0xff] }
   0x9   :  { %vm559_vm4 = vmand %vm32_vm1, %vm547_vm2 }
   0xa   :  { %47 = vrot.lane.b32.xlu0 %v20_v0, %s486_s24  ;;  %50 = vrot.lane.b32.xlu1 %v20_v0, %s487_s25  ;;  %vm567_vm5 = vmand %vm32_vm1, %vm551_vm3 }
   0xb   :  { %vm371_vm6 = vmpackc.low %vm32_vm1, %vm559_vm4 }
   0xc   :  { %vm377_vm7 = vmpackc.low %vm547_vm2, %vm567_vm5 }
   0xd   :  { %vm586_vm11 = vmand %vm52_vm8, %vm547_vm2 }
   0xe   :  { %55 = vrot.lane.b32.xlu0 %v20_v0, %s488_s27  ;;  %58 = vrot.lane.b32.xlu1 %v20_v0, %s489_s28  ;;  %vm389_vm12 = vmpackc.low %vm52_vm8, %vm586_vm11 }
   0xf   :  { %vm598_vm13 = vmand %vm52_vm8, %vm551_vm3 }
  0x10   :  { %vm396_vm15 = vmpackc.low %vm559_vm4, %vm559_vm4 }
  0x11   :  { %vm404_vm4 = vmpackc.low %vm567_vm5, %vm567_vm5 }
  0x12   :  { %69 = vperm.xlu1 %441, %v24_v3   ;;  %64 = vperm.xlu0 %440, %v23_v4   ;;  %vm415_vm5 = vmpackc.low %vm551_vm3, %vm551_vm3 }
  0x13   :  { %vm423_vm3 = vmpackc.low %vm52_vm8, %vm52_vm8 }
  0x74   :  { %v40_v11 = vpop.permute.xlu1 %39  ;;  %v31_v12 = vpop.permute.xlu0 %30 }
  0x78   :  { %v45_v16 = vpop.permute.xlu1 %44  ;;  %v37_v17 = vpop.permute.xlu0 %36 }
  0x79   :  { %v370_v18 = vpack.c.bf16 %v37_v17, %v31_v12  ;;  %v376_v19 = vpack.c.bf16 %v45_v16, %v40_v11  ;;  %v156_v12 = vld [vmem:[%s681_s3] sm:$0xff] }
  0x7b   :  { %372 = vmatprep.subr.msk.bf16.mxu0 %vm371_vm6, %v370_v18 }
  0x7c   :  { %375 = vmatpush3.bf16.msk.msra.mxu0 %vm371_vm6, %v370_v18  ;;  %v48_v20 = vpop.permute.xlu0 %47  ;;  %v51_v22 = vpop.permute.xlu1 %50  ;;  %vm427_vm6 = vmpackc.low %vm598_vm13, %vm598_vm13 }
  0x7d   :  { %378 = vmatprep.subr.msk.bf16.mxu0 %vm377_vm7, %v376_v19  ;;  %v382_v21 = vpack.c.bf16 %v48_v20, %v20_v0 }
  0x80   :  { %381 = vmatpush3.bf16.msk.msra.mxu0 %vm377_vm7, %v376_v19  ;;  %v56_v24 = vpop.permute.xlu0 %55  ;;  %v59_v26 = vpop.permute.xlu1 %58 }
  0x81   :  { %384 = vmatprep.subr.msk.bf16.mxu0 %vm383_vm10, %v382_v21  ;;  %v388_v25 = vpack.c.bf16 %v56_v24, %v51_v22 }
  0x84   :  { %387 = vmatpush3.bf16.msk.msra.mxu0 %vm383_vm10, %v382_v21 }
  0x85   :  { %390 = vmatprep.subr.msk.bf16.mxu0 %vm389_vm12, %v388_v25 }
  0x88   :  { %393 = vmatpush3.bf16.msk.msra.mxu0 %vm389_vm12, %v388_v25 }
  0x89   :  { %365 = vmatprep.subr.msk.mxu0 %vm598_vm13, %v59_v26 }
  0x8c   :  { %366 = vmatpush3.msk.msra.mxu0 %vm598_vm13, %v59_v26 }
  0x8d   :  { %368 = vmatmul.mubr.msk.f32.vlgmr.msra.gmra.mrb[0].mxu0 %vm72_vm0, %v22_v28  ;;  %vm400_vm0 = vmpackc.low %vm32_vm1, %vm32_vm1 }
  0x8e   :  { %vm408_vm1 = vmpackc.low %vm547_vm2, %vm547_vm2 }
  0x8f   :  { %vm419_vm2 = vmpackc.low %vm586_vm11, %vm586_vm11 }
  0x91   :  { %v70_v29 = vpop.permute.xlu1 %69  ;;  %v65_v31 = vpop.permute.xlu0 %64 }
 0x160   :  { %v369_v32 = vpop.f32.mrb[0].mxu0 }
 0x161   :  { %v151_v33 = vadd.f32 %v369_v32, %v70_v29  ;;  %v145_v34 = vpop.f32.mrb[1].mxu0 }
 0x162   :  { %v146_v35 = vadd.f32 %v145_v34, %v65_v31 }
 0x163   :  { %v155_v36 = vmax.f32 %v151_v33, 0.0 }
 0x164   :  { %v154_v37 = vmax.f32 %v146_v35, 0.0 }
 0x166   :  { %v447_v38 = vpack.i.bf16 %v155_v36, %v154_v37  ;;  %v411_v39 = vpack.c.bf16 %v155_v36, %v154_v37 }
 0x168   :  { %448 = vrot.lane.b32.xlu0 %v447_v38, %s485_s23  ;;  %443 = vrot.lane.b32.xlu1 %v447_v38, %s483_s21 }
 0x16c   :  { %458 = vrot.lane.b32.xlu0 %v447_v38, %s484_s22  ;;  %453 = vrot.lane.b32.xlu1 %v447_v38, %s482_s20 }
 0x170   :  { %468 = vrot.lane.b32.xlu0 %v447_v38, %s487_s25  ;;  %463 = vrot.lane.b32.xlu1 %v447_v38, %s486_s24 }
 0x174   :  { %478 = vrot.lane.b32.xlu0 %v447_v38, %s489_s28  ;;  %473 = vrot.lane.b32.xlu1 %v447_v38, %s488_s27 }
 0x178   :  { %217 = vperm.xlu0 %440, %v161_v40   ;;  %212 = vperm.xlu1 %441, %v160_v41  }
 0x1da   :  { %v449_v43 = vpop.permute.xlu0 %448  ;;  %v444_v44 = vpop.permute.xlu1 %443 }
 0x1db   :  { %v446_v45 = vunpack.i.h.bf16 %v444_v44  ;;  %v445_v46 = vunpack.i.l.bf16 %v444_v44  ;;  %v451_v47 = vunpack.i.h.bf16 %v449_v43  ;;  %v450_v48 = vunpack.i.l.bf16 %v449_v43 }
 0x1dd   :  { %v395_v49 = vpack.c.bf16 %v446_v45, %v445_v46  ;;  %v399_v51 = vpack.c.bf16 %v451_v47, %v450_v48 }
 0x1de   :  { %v454_v50 = vpop.permute.xlu1 %453  ;;  %v459_v54 = vpop.permute.xlu0 %458 }
 0x1df   :  { %397 = vmatpush1.bf16.msk.msra.mxu1 %vm396_vm15, %v395_v49  ;;  %v456_v52 = vunpack.i.h.bf16 %v454_v50  ;;  %v455_v53 = vunpack.i.l.bf16 %v454_v50  ;;  %v461_v55 = vunpack.i.h.bf16 %v459_v54  ;;  %v460_v56 = vunpack.i.l.bf16 %v459_v54 }
 0x1e0   :  { %398 = vmatprep.subr.bf16.mxu1 %v492_v30 }
 0x1e1   :  { %v403_v57 = vpack.c.bf16 %v456_v52, %v455_v53  ;;  %v407_v58 = vpack.c.bf16 %v461_v55, %v460_v56 }
 0x1e2   :  { %v464_v59 = vpop.permute.xlu1 %463  ;;  %v469_v62 = vpop.permute.xlu0 %468 }
 0x1e3   :  { %401 = vmatpush1.bf16.msk.msra.mxu1 %vm400_vm0, %v399_v51  ;;  %v466_v60 = vunpack.i.h.bf16 %v464_v59  ;;  %v465_v61 = vunpack.i.l.bf16 %v464_v59  ;;  %v471_v63 = vunpack.i.h.bf16 %v469_v62  ;;  %v470_v0 = vunpack.i.l.bf16 %v469_v62 }
 0x1e4   :  { %402 = vmatprep.subr.bf16.mxu1 %v492_v30 }
 0x1e5   :  { %v414_v1 = vpack.c.bf16 %v466_v60, %v465_v61  ;;  %v418_v3 = vpack.c.bf16 %v471_v63, %v470_v0 }
 0x1e6   :  { %v474_v2 = vpop.permute.xlu1 %473  ;;  %v479_v6 = vpop.permute.xlu0 %478 }
 0x1e7   :  { %405 = vmatpush1.bf16.msk.msra.mxu1 %vm404_vm4, %v403_v57  ;;  %v476_v4 = vunpack.i.h.bf16 %v474_v2  ;;  %v475_v5 = vunpack.i.l.bf16 %v474_v2  ;;  %v481_v7 = vunpack.i.h.bf16 %v479_v6  ;;  %v480_v8 = vunpack.i.l.bf16 %v479_v6 }
 0x1e8   :  { %406 = vmatprep.subr.bf16.mxu1 %v492_v30 }
 0x1e9   :  { %v422_v10 = vpack.c.bf16 %v476_v4, %v475_v5  ;;  %v426_v11 = vpack.c.bf16 %v481_v7, %v480_v8 }
 0x1eb   :  { %409 = vmatpush1.bf16.msk.msra.mxu1 %vm408_vm1, %v407_v58 }
 0x1ec   :  { %410 = vmatprep.subr.bf16.mxu1 %v492_v30 }
 0x1ef   :  { %412 = vmatpush1.bf16.msra.mxu1 %v411_v39 }
 0x1f0   :  { %413 = vmatprep.subr.bf16.mxu1 %v492_v30 }
 0x1f3   :  { %416 = vmatpush1.bf16.msk.msra.mxu1 %vm415_vm5, %v414_v1 }
 0x1f4   :  { %417 = vmatprep.subr.bf16.mxu1 %v492_v30 }
 0x1f7   :  { %420 = vmatpush1.bf16.msk.msra.mxu1 %vm419_vm2, %v418_v3  ;;  %v213_v14 = vpop.permute.xlu1 %212  ;;  %v218_v19 = vpop.permute.xlu0 %217 }
 0x1f8   :  { %421 = vmatprep.subr.bf16.mxu1 %v492_v30 }
 0x1fb   :  { %424 = vmatpush1.bf16.msk.msra.mxu1 %vm423_vm3, %v422_v10 }
 0x1fc   :  { %425 = vmatprep.subr.bf16.mxu1 %v492_v30 }
 0x1ff   :  { %428 = vmatpush1.bf16.msk.msra.mxu1 %vm427_vm6, %v426_v11 }
 0x202   :  { %292 = vmatmul.mubr.f32.vlgmr.msra.gmra.mrb[0].mxu1 %v156_v12 }
 0x203   :  { %337 = vmatprep.mubr.msk.f32.mxu1 %vm220_vm14, %v159_v9 }
 0x206   :  { %297 = vmatmul.mubr.f32.gmra.mrb[2].mxu1 %v158_v13 }
 0x2d5   :  { %v293_v15 = vpop.f32.mrb[0].mxu1 }
 0x2d6   :  { %v294_v16 = vadd.f32 %v293_v15, %v213_v14  ;;  %v295_v17 = vpop.f32.mrb[1].mxu1 }
 0x2d8   :  { %v302_v18 = vmax.f32 %v294_v16, 0.0 }
 0x2d9   :  { %v298_v20 = vpop.f32.mrb[2].mxu1 }
 0x2da   :  { %304 = vst [vmem:[%s682_s5] sm:$0xff] %v302_v18  ;;  %v299_v21 = vadd.f32 %v298_v20, %v218_v19  ;;  %v300_v22 = vpop.f32.mrb[3].mxu1 }
 0x2dc   :  { %v303_v23 = vmax.f32 %v299_v21, 0.0 }
 0x2de   :  { %305 = vst [vmem:[%s682_s5 + $0x8] sm:$0xff] %v303_v23 }

// kernel: encoder_forward.2
= control target key start
LH: loop header
LB: loop body
LE: loop exit
PB: predicated region body
PF: predicated region fallthrough
CT: control target
= control target key end

     0   :  { %s860_s18 = smov 0   ;;  %s1167_s0 = inlined_call_operand.vmem [shape: f32[2,4,256], index: 0, kind: input, shape index: {}]   ;;  %s1168_s1 = inlined_call_operand.vmem [shape: f32[8,36], index: 1, kind: input, shape index: {}]   ;;  %s1169_s2 = inlined_call_operand.vmem [shape: f32[8,1], index: 2, kind: input, shape index: {}]   ;;  %s1170_s3 = inlined_call_operand.vmem [shape: f32[8,72], index: 3, kind: input, shape index: {}]   ;;  %s1171_s4 = inlined_call_operand.vmem [shape: f32[8,1], index: 4, kind: input, shape index: {}]   ;;  %s1172_s5 = inlined_call_operand.vmem [shape: f32[2,8,256], index: 5, kind: output, shape index: {}]  }
   0x1 LB: > { %s654_s19 = sadd.s32 4294967295, %s817_s18   ;;  %p658_p0 = scmp.ge.s32.totalorder %s817_s18, 1  ;;  %s817_s18 = sphi %s860_s18, %s15_s18  }
   0x2   : > { %p187_p1 = scmp.lt.s32.totalorder %s817_s18, 3 }
   0x4   : > { %p188_p2 = pnand %p658_p0, %p187_p1 }
   0x5   : > { %p215_p3 = scmp.lt.s32.totalorder (!%p188_p2), %s654_s19, 1  ;;  %s819_s24 = smov (!%p188_p2), 16   ;;  %v827_v3 = vmov (!%p188_p2), 0.0   ;;  %v227_v4 = vld [vmem:[%s1169_s2] sm:$0xff] (!%p188_p2)  ;;  %v828_v5 = vmov (!%p188_p2), 0   ;;  %v228_v6 = vlaneseq (!%p188_p2) }
   0x6   : > { %191 = sbr.rel (%p188_p2) target bundleno = 740 (0x2e4), region = 40  ;;  %s820_s25 = smov (!%p188_p2), 17   ;;  %440 = vmatprep.mubr.f32.mxu0 (!%p188_p2), %v827_v3  ;;  %588 = vmatprep.mubr.f32.mxu1 (!%p188_p2), %v827_v3 }
   0x7   : > { %s821_s26 = smov (!%p188_p2), 1   ;;  %s822_s27 = smov (!%p188_p2), 15   ;;  %773 = vset.pattern.permute.xlu1 (!%p188_p2), %v828_v5  ;;  %809 = vset.pattern.permute.xlu0 (!%p188_p2), %v828_v5  ;;  %v896_v7 = vand.u32 (!%p188_p2), 127, %v228_v6 }
   0x8   : > { %s823_s28 = smov (!%p188_p2), 127   ;;  %s824_s29 = smov (!%p188_p2), 112  }
   0x9   : > { %s825_s30 = smov (!%p188_p2), 113   ;;  %s826_s6 = smov (!%p188_p2), 111   ;;  %v230_v8 = vadd.s32 (!%p188_p2), 128, %v896_v7  ;;  %v233_v9 = vshra.s32 (!%p188_p2), %v896_v7, 4  ;;  %v231_v14 = vand.u32 (!%p188_p2), 15, %v896_v7  ;;  %vm1173_vm0 = vcmp.lt.s32.totalorder (!%p188_p2), %v896_v7, 16 }
   0xa   : > { %vm1175_vm1 = vcmp.lt.s32.totalorder (!%p188_p2), %v896_v7, 1  ;;  %vm1174_vm2 = vcmp.lt.s32.totalorder (!%p188_p2), %v896_v7, 17  ;;  %vm1176_vm7 = vcmp.lt.s32.totalorder (!%p188_p2), %v896_v7, 127  ;;  %vm1178_vm11 = vcmp.lt.s32.totalorder (!%p188_p2), %v896_v7, 15 }
   0xb   : > { %v234_v10 = vshra.s32 (!%p188_p2), %v230_v8, 4  ;;  %v232_v11 = vand.u32 (!%p188_p2), 15, %v230_v8  ;;  %v900_v12 = vand.u32 (!%p188_p2), 15, %v233_v9  ;;  %vm914_vm6 = vcmp.lt.s32.totalorder (!%p188_p2), %v231_v14, 15 }
   0xc   : > { %vm919_vm9 = vcmp.ge.s32.totalorder (!%p188_p2), %v231_v14, 1 }
   0xd   : > { %s1243_s19 = smov (!%p215_p3, %s654_s19), 1  ;;  %v902_v13 = vand.u32 15, %v234_v10  ;;  %vm909_vm4 = vcmp.ge.s32.totalorder %v232_v11, 1  ;;  %vm1179_vm5 = vcmp.ge.s32.totalorder %v900_v12, 1  ;;  %vm927_vm10 = vcmp.lt.s32.totalorder %v232_v11, 15 }
   0xe   : > { %s685_s20 = sshll.u32 %s1243_s19, 3  ;;  %vm952_vm13 = vmand %vm1179_vm5, %vm919_vm9  ;;  %vm1181_vm14 = vcmp.lt.s32.totalorder %v900_v12, 15  ;;  %s686_s15 = sshll.u32 %s1243_s19, 4 }
   0xf   : > { %s219_s23 = scalar_lea.vmem %s1167_s0, %s685_s20  ;;  %vm1180_vm3 = vcmp.ge.s32.totalorder %v902_v13, 1  ;;  %vm1183_vm15 = vcmp.lt.s32.totalorder %v902_v13, 15  ;;  %s224_s20 = scalar_lea.vmem %s1172_s5, %s686_s15 }
  0x10   : > { %v874_v0 = vld [vmem:[%s219_s23] sm:$0xff]  ;;  %vm938_vm12 = vmand %vm1180_vm3, %vm909_vm4 }
  0x11   : > { %v878_v1 = vcombine.high %v874_v0, %v874_v0  ;;  %vm972_vm8 = vmand %vm1180_vm3, %vm927_vm10 }
  0x13   : > { %v738_v2 = vpack.i.bf16 %v878_v1, %v874_v0 }
  0x15   : > { %739 = vrot.lane.b32.xlu0 %v738_v2, %s819_s24  ;;  %749 = vrot.lane.b32.xlu1 %v738_v2, %s820_s25 }
  0x19   : > { %744 = vrot.lane.b32.xlu0 %v738_v2, %s821_s26  ;;  %754 = vrot.lane.b32.xlu1 %v738_v2, %s822_s27 }
  0x1d   : > { %759 = vrot.lane.b32.xlu0 %v738_v2, %s823_s28  ;;  %764 = vrot.lane.b32.xlu1 %v738_v2, %s824_s29 }
  0x21   : > { %769 = vrot.lane.b32.xlu0 %v738_v2, %s825_s30  ;;  %317 = vrot.lane.b32.xlu1 %v874_v0, %s826_s6 }
  0x25   : > { %319 = vrot.lane.b32.xlu0 %v878_v1, %s826_s6  ;;  %363 = vperm.xlu1 %773, %v227_v4  }
  0x87   : > { %v740_v15 = vpop.permute.xlu0 %739  ;;  %v750_v16 = vpop.permute.xlu1 %749 }
  0x88   : > { %v742_v18 = vunpack.i.h.bf16 %v740_v15  ;;  %v741_v19 = vunpack.i.l.bf16 %v740_v15  ;;  %v752_v20 = vunpack.i.h.bf16 %v750_v16  ;;  %v751_v21 = vunpack.i.l.bf16 %v750_v16 }
  0x8a   : > { %v260_v24 = vsel %vm1173_vm0, %v741_v19, %v742_v18  ;;  %v261_v25 = vsel %vm1173_vm0, %v742_v18, %v741_v19  ;;  %v245_v29 = vsel %vm1174_vm2, %v751_v21, %v752_v20  ;;  %v246_v32 = vsel %vm1174_vm2, %v752_v20, %v751_v21 }
  0x8b   : > { %v745_v27 = vpop.permute.xlu0 %744  ;;  %v755_v28 = vpop.permute.xlu1 %754  ;;  %v263_v31 = vsel %vm1180_vm3, %v260_v24, 0.0  ;;  %v262_v33 = vsel %vm1179_vm5, %v261_v25, 0.0  ;;  %vm1177_vm0 = vcmp.lt.s32.totalorder %v896_v7, 112  ;;  %vm1182_vm2 = vcmp.lt.s32.totalorder %v896_v7, 113 }
  0x8c   : > { %v747_v34 = vunpack.i.h.bf16 %v745_v27  ;;  %v746_v35 = vunpack.i.l.bf16 %v745_v27  ;;  %v757_v36 = vunpack.i.h.bf16 %v755_v28  ;;  %v756_v37 = vunpack.i.l.bf16 %v755_v28 }
  0x8d   : > { %v254_v41 = vsel %vm938_vm12, %v245_v29, 0.0  ;;  %v331_v47 = vrot.slane %v263_v31, 4  ;;  %v253_v48 = vsel %vm952_vm13, %v246_v32, 0.0  ;;  %v330_v49 = vrot.slane %v262_v33, 4 }
  0x8e   : > { %v282_v39 = vsel %vm1175_vm1, %v746_v35, %v747_v34  ;;  %v283_v40 = vsel %vm1175_vm1, %v747_v34, %v746_v35  ;;  %v269_v42 = vsel %vm1178_vm11, %v756_v37, %v757_v36  ;;  %v270_v56 = vsel %vm1178_vm11, %v757_v36, %v756_v37  ;;  %vm988_vm1 = vmand %vm1179_vm5, %vm914_vm6 }
  0x8f   : > { %v760_v44 = vpop.permute.xlu0 %759  ;;  %v765_v45 = vpop.permute.xlu1 %764  ;;  %v285_v46 = vsel %vm909_vm4, %v282_v39, 0.0  ;;  %v276_v54 = vsel %vm972_vm8, %v269_v42, 0.0  ;;  %v284_v58 = vsel %vm919_vm9, %v283_v40, 0.0  ;;  %v275_v10 = vsel %vm988_vm1, %v270_v56, 0.0  ;;  %vm1018_vm11 = vmand %vm1183_vm15, %vm909_vm4 }
  0x90   : > { %v762_v50 = vunpack.i.h.bf16 %v760_v44  ;;  %v761_v51 = vunpack.i.l.bf16 %v760_v44  ;;  %v767_v52 = vunpack.i.h.bf16 %v765_v45  ;;  %v766_v53 = vunpack.i.l.bf16 %v765_v45 }
  0x91   : > { %v337_v55 = vrot.slane %v285_v46, 4  ;;  %v336_v16 = vrot.slane %v284_v58, 4  ;;  %v1212_v37 = vmov 0  ;;  %v1217_v45 = vmov 0  ;;  %v450_v58 = vld [vmem:[%s1171_s4] sm:$0xff] }
  0x92   : > { %v291_v59 = vsel %vm1176_vm7, %v761_v51, %v762_v50  ;;  %v292_v60 = vsel %vm1176_vm7, %v762_v50, %v761_v51  ;;  %v313_v61 = vsel %vm1177_vm0, %v766_v53, %v767_v52  ;;  %v314_v62 = vsel %vm1177_vm0, %v767_v52, %v766_v53 }
  0x93   : > { %v293_v63 = vsel %vm914_vm6, %v291_v59, 0.0  ;;  %v294_v2 = vsel %vm927_vm10, %v292_v60, 0.0  ;;  %v315_v3 = vsel %vm1181_vm14, %v313_v61, 0.0  ;;  %v316_v4 = vsel %vm1183_vm15, %v314_v62, 0.0  ;;  %v770_v5 = vpop.permute.xlu0 %769  ;;  %v318_v24 = vpop.permute.xlu1 %317 }
  0x94   : > { %v343_v6 = vrot.slane %v294_v2, 4  ;;  %v349_v8 = vrot.slane %v316_v4, 4  ;;  %vm1202_vm7 = vcmask 1043456   ;;  %v772_v11 = vunpack.i.h.bf16 %v770_v5 }
  0x95   : > { %v354_v9 = vsel %vm1202_vm7, %v254_v41, %v331_v47  ;;  %v771_v14 = vunpack.i.l.bf16 %v770_v5  ;;  %vm1203_vm0 = vmmov %vm1202_vm7  ;;  %v342_v19 = vrot.slane %v293_v63, 4  ;;  %v348_v20 = vrot.slane %v315_v3, 4 }
  0x96   : > { %v356_v15 = vsel %vm1203_vm0, %v276_v54, %v337_v55  ;;  %vm1027_vm0 = vmand %vm1181_vm14, %vm919_vm9 }
  0x97   : > { %v687_v21 = vpack.c.bf16 %v356_v15, %v354_v9  ;;  %v300_v27 = vsel %vm1182_vm2, %v771_v14, %v772_v11  ;;  %v301_v28 = vsel %vm1182_vm2, %v772_v11, %v771_v14  ;;  %vm1208_vm5 = vmmov %vm1202_vm7  ;;  %v320_v32 = vpop.permute.xlu0 %319 }
  0x98   : > { %v353_v29 = vsel %vm1208_vm5, %v253_v48, %v330_v49  ;;  %vm1209_vm3 = vmmov %vm1208_vm5  ;;  %v307_v34 = vsel %vm1018_vm11, %v301_v28, 0.0  ;;  %v306_v40 = vsel %vm1027_vm0, %v300_v27, 0.0  ;;  %v226_v48 = vld [vmem:[%s1168_s1] sm:$0xff] }
  0x99   : > { %v355_v31 = vsel %vm1209_vm3, %v275_v10, %v336_v16  ;;  %688 = vmatprep.subr.bf16.mxu0 %v687_v21  ;;  %vm1210_vm14 = vmmov %vm1209_vm3 }
  0x9a   : > { %v689_v33 = vpack.c.bf16 %v355_v31, %v353_v29  ;;  %v358_v35 = vsel %vm1210_vm14, %v878_v1, %v343_v6  ;;  %vm1211_vm7 = vmmov %vm1209_vm3  ;;  %vm1214_vm3 = vcmp.lt.s32.totalorder %v896_v7, 111  ;;  %v357_v1 = vsel %vm1208_vm5, %v874_v0, %v342_v19 }
  0x9b   : > { %v360_v36 = vsel %vm1211_vm7, %v307_v34, %v349_v8  ;;  %vm1046_vm2 = vmand %vm1183_vm15, %vm927_vm10  ;;  %v323_v39 = vsel %vm1214_vm3, %v320_v32, %v318_v24  ;;  %vm1216_vm7 = vcmp.lt.s32.totalorder %v900_v12, 15  ;;  %v322_v46 = vsel %vm1214_vm3, %v318_v24, %v320_v32 }
  0x9c   : > { %v1213_v37 = vsel %vm1046_vm2, 4294967295, %v1212_v37  ;;  %690 = vmatpush1.bf16.msra.mxu0 %v689_v33  ;;  %v691_v41 = vpack.c.bf16 %v360_v36, %v358_v35  ;;  %vm1215_vm14 = vmmov %vm1208_vm5  ;;  %v327_v47 = vsel %vm1046_vm2, %v323_v39, 0.0  ;;  %vm1220_vm3 = vcmp.lt.s32.totalorder %v896_v7, 17 }
  0x9d   : > { %v359_v42 = vsel %vm1215_vm14, %v306_v40, %v348_v20  ;;  %vm1061_vm15 = vmand %vm1216_vm7, %vm914_vm6  ;;  %vm366_vm14 = vcmask 293888  }
  0x9e   : > { %v693_v44 = vpack.c.bf16 %v359_v42, %v357_v1  ;;  %692 = vmatprep.subr.bf16.mxu0 %v691_v41  ;;  %v1218_v45 = vsel %vm1061_vm15, 4294967295, %v1217_v45  ;;  %v326_v0 = vsel %vm1061_vm15, %v322_v46, 0.0  ;;  %vm1219_vm7 = vmmov %vm1208_vm5 }
  0x9f   : > { %vm1223_vm15 = vmmov %vm1220_vm3 }
  0xa0   : > { %694 = vmatpush1.bf16.msra.mxu0 %v693_v44 }
  0xa1   : > { %663 = vmatprep.subr.msk.mxu0 %vm1208_vm5, %v327_v47  ;;  %vm1221_vm5 = vcmp.lt.s32.totalorder %v896_v7, 16 }
  0xa2   : > { %vm1224_vm2 = vmmov %vm1221_vm5 }
  0xa4   : > { %664 = vmatpush1.msk.msra.mxu0 %vm1219_vm7, %v326_v0  ;;  %v364_v49 = vpop.permute.xlu1 %363 }
  0xa5   : > { %665 = vmatmul.mubr.msk.f32.vlgmr.msra.gmra.mrb[0].mxu0 %vm366_vm14, %v226_v48  ;;  %vm1222_vm14 = vcmp.ge.s32.totalorder %v902_v13, 1 }
  0xa6   : > { %vm696_vm7 = vmpackc.low %vm1222_vm14, %vm938_vm12  ;;  %vm1226_vm12 = vcmp.lt.s32.totalorder %v896_v7, 1 }
 0x178   : > { %v442_v50 = vpop.f32.mrb[0].mxu0 }
 0x179   : > { %v443_v51 = vadd.f32 %v442_v50, %v364_v49  ;;  %v444_v52 = vpop.f32.mrb[1].mxu0 }
 0x17a   : > { %v445_v53 = vadd.f32 %v444_v52, %v364_v49 }
 0x17b   : > { %v1076_v54 = vmax.f32 %v443_v51, 0.0 }
 0x17c   : > { %v448_v55 = vmax.f32 %v445_v53, 0.0 }
 0x17e   : > { %v779_v56 = vpack.i.bf16 %v448_v55, %v1076_v54 }
 0x180   : > { %780 = vrot.lane.b32.xlu1 %v779_v56, %s819_s24  ;;  %775 = vrot.lane.b32.xlu0 %v779_v56, %s820_s25 }
 0x184   : > { %790 = vrot.lane.b32.xlu1 %v779_v56, %s821_s26  ;;  %785 = vrot.lane.b32.xlu0 %v779_v56, %s822_s27 }
 0x188   : > { %800 = vrot.lane.b32.xlu1 %v779_v56, %s825_s30  ;;  %795 = vrot.lane.b32.xlu0 %v779_v56, %s823_s28 }
 0x18c   : > { %507 = vrot.lane.b32.xlu1 %v1076_v54, %s826_s6  ;;  %805 = vrot.lane.b32.xlu0 %v779_v56, %s824_s29 }
 0x190   : > { %517 = vperm.xlu1 %773, %v450_v58   ;;  %509 = vrot.lane.b32.xlu0 %v448_v55, %s826_s6 }
 0x1f2   : > { %v781_v59 = vpop.permute.xlu1 %780  ;;  %v776_v60 = vpop.permute.xlu0 %775 }
 0x1f3   : > { %v783_v61 = vunpack.i.h.bf16 %v781_v59  ;;  %v782_v62 = vunpack.i.l.bf16 %v781_v59  ;;  %v778_v63 = vunpack.i.h.bf16 %v776_v60  ;;  %v777_v2 = vunpack.i.l.bf16 %v776_v60 }
 0x1f5   : > { %v455_v3 = vsel %vm1220_vm3, %v777_v2, %v778_v63  ;;  %v463_v4 = vsel %vm1221_vm5, %v782_v62, %v783_v61  ;;  %v456_v5 = vsel %vm1223_vm15, %v778_v63, %v777_v2  ;;  %v464_v6 = vsel %vm1224_vm2, %v783_v61, %v782_v62  ;;  %vm1227_vm15 = vmmov %vm1226_vm12 }
 0x1f6   : > { %v791_v8 = vpop.permute.xlu1 %790  ;;  %v786_v9 = vpop.permute.xlu0 %785  ;;  %v695_v10 = vpack.c.bf16 %v463_v4, %v455_v3  ;;  %v698_v11 = vpack.c.bf16 %v464_v6, %v456_v5  ;;  %vm1225_vm3 = vcmp.ge.s32.totalorder %v900_v12, 1  ;;  %vm1228_vm2 = vcmp.lt.s32.totalorder %v896_v7, 15 }
 0x1f7   : > { %vm699_vm5 = vmpackc.low %vm1225_vm3, %vm952_vm13  ;;  %v793_v14 = vunpack.i.h.bf16 %v791_v8  ;;  %v792_v30 = vunpack.i.l.bf16 %v791_v8  ;;  %v788_v15 = vunpack.i.h.bf16 %v786_v9  ;;  %v787_v16 = vunpack.i.l.bf16 %v786_v9 }
 0x1f8   : > { %697 = vmatprep.subr.msk.bf16.mxu1 %vm696_vm7, %v695_v10  ;;  %vm1229_vm14 = vmmov %vm1228_vm2  ;;  %vm1230_vm3 = vcmp.lt.s32.totalorder %v896_v7, 127 }
 0x1f9   : > { %v479_v19 = vsel %vm1226_vm12, %v792_v30, %v793_v14  ;;  %v480_v20 = vsel %vm1227_vm15, %v793_v14, %v792_v30  ;;  %v471_v21 = vsel %vm1228_vm2, %v787_v16, %v788_v15  ;;  %v472_v38 = vsel %vm1229_vm14, %v788_v15, %v787_v16  ;;  %700 = vmatpush1.bf16.msk.msra.mxu1 %vm699_vm5, %v698_v11  ;;  %vm702_vm13 = vmpackc.low %vm909_vm4, %vm972_vm8 }
 0x1fa   : > { %v701_v24 = vpack.c.bf16 %v479_v19, %v471_v21  ;;  %v704_v27 = vpack.c.bf16 %v480_v20, %v472_v38  ;;  %v801_v28 = vpop.permute.xlu1 %800  ;;  %v796_v29 = vpop.permute.xlu0 %795  ;;  %vm705_vm7 = vmpackc.low %vm919_vm9, %vm988_vm1  ;;  %vm829_vm4 = vmmov 1   ;;  %vm1232_vm9 = vcmp.lt.s32.totalorder %v896_v7, 113 }
 0x1fb   : > { %v798_v31 = vunpack.i.h.bf16 %v796_v29  ;;  %v797_v32 = vunpack.i.l.bf16 %v796_v29  ;;  %v803_v33 = vunpack.i.h.bf16 %v801_v28  ;;  %v802_v34 = vunpack.i.l.bf16 %v801_v28  ;;  %vm1231_vm5 = vmmov %vm1230_vm3 }
 0x1fc   : > { %703 = vmatprep.subr.msk.bf16.mxu1 %vm702_vm13, %v701_v24  ;;  %vm708_vm8 = vmpackc.low %vm927_vm10, %vm829_vm4  ;;  %vm1234_vm15 = vcmp.lt.s32.totalorder %v896_v7, 112  ;;  %vm1237_vm14 = vcmp.lt.s32.totalorder %v900_v12, 15 }
 0x1fd   : > { %v487_v43 = vsel %vm1230_vm3, %v797_v32, %v798_v31  ;;  %v488_v17 = vsel %vm1231_vm5, %v798_v31, %v797_v32  ;;  %706 = vmatpush1.bf16.msk.msra.mxu1 %vm705_vm7, %v704_v27  ;;  %vm711_vm1 = vmpackc.low %vm914_vm6, %vm829_vm4  ;;  %v495_v40 = vsel %vm1232_vm9, %v802_v34, %v803_v33  ;;  %vm1236_vm6 = vcmp.lt.s32.totalorder %v902_v13, 15  ;;  %v449_v13 = vld [vmem:[%s1170_s3] sm:$0xff] }
 0x1fe   : > { %v707_v57 = vpack.c.bf16 %v488_v17, %v448_v55  ;;  %v710_v23 = vpack.c.bf16 %v487_v43, %v1076_v54  ;;  %v806_v35 = vpop.permute.xlu0 %805  ;;  %vm1233_vm12 = vmmov %vm1232_vm9  ;;  %v508_v46 = vpop.permute.xlu1 %507  ;;  %vm1238_vm7 = vcmp.lt.s32.totalorder %v896_v7, 111  ;;  %vm1239_vm3 = vnez %v1213_v37 }
 0x1ff   : > { %v808_v36 = vunpack.i.h.bf16 %v806_v35  ;;  %v807_v39 = vunpack.i.l.bf16 %v806_v35  ;;  %v496_v41 = vsel %vm1233_vm12, %v803_v33, %v802_v34  ;;  %vm1235_vm10 = vmmov %vm1234_vm15  ;;  %vm1241_vm4 = vnez %v1218_v45 }
 0x200   : > { %709 = vmatprep.subr.msk.bf16.mxu1 %vm708_vm8, %v707_v57  ;;  %vm714_vm2 = vmpackc.low %vm1236_vm6, %vm1018_vm11  ;;  %vm520_vm11 = vcmask 588800  }
 0x201   : > { %v503_v26 = vsel %vm1234_vm15, %v807_v39, %v808_v36  ;;  %v504_v1 = vsel %vm1235_vm10, %v808_v36, %v807_v39  ;;  %712 = vmatpush1.bf16.msk.msra.mxu1 %vm711_vm1, %v710_v23  ;;  %vm717_vm13 = vmpackc.low %vm1237_vm14, %vm1027_vm0 }
 0x202   : > { %v713_v22 = vpack.c.bf16 %v504_v1, %v496_v41  ;;  %v716_v42 = vpack.c.bf16 %v503_v26, %v495_v40  ;;  %v510_v44 = vpop.permute.xlu0 %509  ;;  %vm1240_vm5 = vmmov %vm1238_vm7 }
 0x203   : > { %v512_v47 = vsel %vm1238_vm7, %v510_v44, %v508_v46  ;;  %v511_v18 = vsel %vm1240_vm5, %v508_v46, %v510_v44 }
 0x204   : > { %715 = vmatprep.subr.msk.bf16.mxu1 %vm714_vm2, %v713_v22 }
 0x205   : > { %718 = vmatpush1.bf16.msk.msra.mxu1 %vm717_vm13, %v716_v42 }
 0x206   : > { %680 = vmatprep.subr.msk.mxu1 %vm1239_vm3, %v512_v47 }
 0x209   : > { %681 = vmatpush1.msk.msra.mxu1 %vm1241_vm4, %v511_v18 }
 0x20a   : > { %682 = vmatmul.mubr.msk.f32.vlgmr.msra.gmra.mrb[0].mxu1 %vm520_vm11, %v449_v13 }
 0x20f   : > { %v518_v12 = vpop.permute.xlu1 %517 }
 0x2dd   : > { %v590_v25 = vpop.f32.mrb[0].mxu1 }
 0x2de   : > { %v591_v0 = vadd.f32 %v590_v25, %v518_v12  ;;  %v592_v48 = vpop.f32.mrb[1].mxu1 }
 0x2df   : > { %v593_v37 = vadd.f32 %v592_v48, %v518_v12 }
 0x2e0   : > { %v595_v49 = vmax.f32 %v591_v0, 0.0 }
 0x2e1   : > { %v596_v50 = vmax.f32 %v593_v37, 0.0 }
 0x2e2   : > { %597 = vst [vmem:[%s224_s20] sm:$0xff] %v595_v49 }
 0x2e3   : > { %598 = vst [vmem:[%s224_s20 + $0x8] sm:$0xff] %v596_v50 }
 0x2e4 PF: > { %s15_s18 = sadd.s32 1, %s817_s18  }
 0x2e5   : > { %p12_p4 = scmp.ge.s32.totalorder %s15_s18, 4  }
 0x2e7   :  { %14 = sbr.rel (!%p12_p4) target bundleno = 1 (0x1), region = 70 }

</bundles_post_ra>
